<compile_context>
chip_gen: v6e
topology: v6e:2x2x1
jax: 0.10.0
libtpu: 0.0.40
codegen_flags: <defaults>
</compile_context>

<pallas_src>
import math

import jax
import jax.numpy as jnp
from jax.experimental import pallas as pl
from jax.experimental.pallas import tpu as pltpu

# ----------------------------- model hyper-params -----------------------------
EMBED_DIM = 32
N_HEAD = 2
HIDDEN_DIM = EMBED_DIM // N_HEAD          # 16 (module default: embed_dim // n_head)
PROJ_DIM = N_HEAD * HIDDEN_DIM            # 32
OUT_DIM = EMBED_DIM                       # module default: out_dim = embed_dim

B = 2        # mini-batch
K_LEN = 8    # key sequence length
Q_LEN = 8    # query sequence length


# --------------------------------- kernel ------------------------------------
def _make_attention_kernel(mb, k_len, q_len):
    """Whole-problem kernel (no grid): mb, k_len, q_len are static."""

    def kernel(kq_ref, wkq_ref, bkq_ref, wpT_ref, bp_ref, out_ref, score_ref):
        # kq_ref:    (mb*(k_len+q_len), EMBED_DIM)  rows [0, mb*k_len) = k, rest = q
        # wkq_ref:   (EMBED_DIM, 2*PROJ_DIM)        cols [0, PROJ_DIM) = wk.T, rest = wq.T
        # bkq_ref:   (1, 2*PROJ_DIM)
        # wpT_ref:   (PROJ_DIM, OUT_DIM)            (= wp.T)
        # bp_ref:    (1, OUT_DIM)
        # out_ref:   (mb*q_len, OUT_DIM)
        # score_ref: (mb*q_len, N_HEAD*k_len)

        # Single fused projection matmul for both K and Q (all batch rows at once).
        proj = jnp.dot(kq_ref[...], wkq_ref[...],
                       preferred_element_type=jnp.float32) + bkq_ref[...]
        wpT = wpT_ref[...]
        bp = bp_ref[...]

        for b in range(mb):                         # static unroll over batch
            kx = proj[b * k_len:(b + 1) * k_len, :PROJ_DIM]                    # (K, NH*HID)
            qx = proj[mb * k_len + b * q_len:
                      mb * k_len + (b + 1) * q_len, PROJ_DIM:]                 # (Q, NH*HID)

            acc = jnp.zeros((q_len, OUT_DIM), jnp.float32)
            for h in range(N_HEAD):                 # static unroll over heads
                kh = kx[:, h * HIDDEN_DIM:(h + 1) * HIDDEN_DIM]                # (K, HID)
                qh = qx[:, h * HIDDEN_DIM:(h + 1) * HIDDEN_DIM]                # (Q, HID)

                # dot_product score (contract last dims -> no in-kernel transpose)
                s = jax.lax.dot_general(qh, kh, (((1,), (1,)), ((), ())),
                                        preferred_element_type=jnp.float32)   # (Q, K)
                s = s - jnp.max(s, axis=-1, keepdims=True)
                p = jnp.exp(s)
                p = p * pl.reciprocal(jnp.sum(p, axis=-1, keepdims=True),
                                      approx=False)

                score_ref[pl.ds(b * q_len, q_len), pl.ds(h * k_len, k_len)] = p

                head = jnp.dot(p, kh, preferred_element_type=jnp.float32)      # (Q, HID)
                # per-head partial output projection, accumulated (no concat)
                acc = acc + jnp.dot(head,
                                    wpT[h * HIDDEN_DIM:(h + 1) * HIDDEN_DIM, :],
                                    preferred_element_type=jnp.float32)

            out_ref[pl.ds(b * q_len, q_len), :] = acc + bp
        # dropout(p=0) is the identity; nothing to do.

    return kernel


# -------------------------------- wrapper -------------------------------------
def attention_forward(k, q, params):
    """Returns (output, score) matching the PyTorch module semantics.

    output: (B, Q_LEN, OUT_DIM)
    score : (N_HEAD * B, Q_LEN, K_LEN)   (head-major batch ordering, as in torch)
    """
    if q.ndim == 2:
        q = q[:, None, :]
    if k.ndim == 2:
        k = k[:, None, :]

    wk, bk, wq, bq, wp, bp = params
    mb, k_len, _ = k.shape
    q_len = q.shape[1]

    # ---- host-side packing (one-time, outside the hot kernel) ----
    # fused K/Q projection operands
    kq_in = jnp.concatenate([k.reshape(mb * k_len, EMBED_DIM),
                             q.reshape(mb * q_len, EMBED_DIM)], axis=0)
    wkq_t = jnp.concatenate([wk.T, wq.T], axis=1)            # (E, 2*PROJ_DIM)
    bkq = jnp.concatenate([bk, bq]).reshape(1, 2 * PROJ_DIM)
    # pre-transposed output projection
    wp_t = wp.T                                              # (PROJ_DIM, OUT_DIM)
    bp2 = bp.reshape(1, OUT_DIM)

    # rough cost hint: this custom call is tiny
    flops = (2 * kq_in.shape[0] * EMBED_DIM * 2 * PROJ_DIM
             + mb * N_HEAD * (2 * q_len * k_len * HIDDEN_DIM
                              + 2 * q_len * HIDDEN_DIM * k_len
                              + 2 * q_len * HIDDEN_DIM * OUT_DIM))
    bytes_accessed = 4 * (kq_in.size + wkq_t.size + bkq.size + wp_t.size + bp2.size
                          + mb * q_len * OUT_DIM + mb * q_len * N_HEAD * k_len)

    kernel = _make_attention_kernel(mb, k_len, q_len)

    out2d, score2d = pl.pallas_call(
        kernel,
        out_shape=(
            jax.ShapeDtypeStruct((mb * q_len, OUT_DIM), jnp.float32),
            jax.ShapeDtypeStruct((mb * q_len, N_HEAD * k_len), jnp.float32),
        ),
        in_specs=[pl.BlockSpec(memory_space=pltpu.MemorySpace.VMEM)] * 5,
        out_specs=(pl.BlockSpec(memory_space=pltpu.MemorySpace.VMEM),
                   pl.BlockSpec(memory_space=pltpu.MemorySpace.VMEM)),
        cost_estimate=pl.CostEstimate(flops=flops,
                                      transcendentals=mb * N_HEAD * q_len * k_len,
                                      bytes_accessed=bytes_accessed),
    )(kq_in, wkq_t, bkq, wp_t, bp2)

    out = out2d.reshape(mb, q_len, OUT_DIM)
    # (B*Q, NH*K) -> (NH*B, Q, K): same ordering as torch's permute(2,0,1,3).view(-1,...)
    score = (score2d.reshape(mb, q_len, N_HEAD, k_len)
             .transpose(2, 0, 1, 3)
             .reshape(N_HEAD * mb, q_len, k_len))
    return out, score


# ------------------------------ pure-JAX reference ----------------------------
def attention_reference(k, q, params):
    wk, bk, wq, bq, wp, bp = params
    mb, k_len, _ = k.shape
    q_len = q.shape[1]
    kx = (k @ wk.T + bk).reshape(mb, k_len, N_HEAD, HIDDEN_DIM)
    kx = jnp.transpose(kx, (2, 0, 1, 3)).reshape(-1, k_len, HIDDEN_DIM)
    qx = (q @ wq.T + bq).reshape(mb, q_len, N_HEAD, HIDDEN_DIM)
    qx = jnp.transpose(qx, (2, 0, 1, 3)).reshape(-1, q_len, HIDDEN_DIM)
    score = jnp.einsum('bqd,bkd->bqk', qx, kx)
    score = jax.nn.softmax(score, axis=-1)
    out = jnp.einsum('bqk,bkd->bqd', score, kx)
    out = jnp.concatenate(jnp.split(out, N_HEAD, axis=0), axis=-1)
    out = out @ wp.T + bp
    return out, score


# --------------------------------- main ---------------------------------------
def init_params(key):
    """Deterministic nn.Linear-style init: U(-1/sqrt(fan_in), 1/sqrt(fan_in))."""
    ks = jax.random.split(key, 6)

    def lin(kw, kb, out_f, in_f):
        bound = 1.0 / math.sqrt(in_f)
        w = jax.random.uniform(kw, (out_f, in_f), jnp.float32, -bound, bound)
        b = jax.random.uniform(kb, (out_f,), jnp.float32, -bound, bound)
        return w, b

    wk, bk = lin(ks[0], ks[1], PROJ_DIM, EMBED_DIM)
    wq, bq = lin(ks[2], ks[3], PROJ_DIM, EMBED_DIM)
    wp, bp = lin(ks[4], ks[5], OUT_DIM, PROJ_DIM)
    return (wk, bk, wq, bq, wp, bp)


if __name__ == "__main__":
    root = jax.random.PRNGKey(0)
    k_key, q_key, p_key = jax.random.split(root, 3)

    k_in = jax.random.normal(k_key, (B, K_LEN, EMBED_DIM), jnp.float32)
    q_in = jax.random.normal(q_key, (B, Q_LEN, EMBED_DIM), jnp.float32)
    params = init_params(p_key)

    out, score = attention_forward(k_in, q_in, params)
    out = jax.block_until_ready(out)
    score = jax.block_until_ready(score)

    ref_out, ref_score = attention_reference(k_in, q_in, params)
    assert out.shape == (B, Q_LEN, OUT_DIM)
    assert score.shape == (N_HEAD * B, Q_LEN, K_LEN)
    assert jnp.allclose(out, ref_out, atol=1e-4, rtol=1e-4)
    assert jnp.allclose(score, ref_score, atol=1e-5, rtol=1e-4)

    print("KERNEL_OK")
</pallas_src>

<mosaic_0001>
module attributes {stable_mosaic.version = 11 : i64} {
  func.func @kernel(%arg0: memref<32x32xf32, #tpu.memory_space<vmem>>, %arg1: memref<32x64xf32, #tpu.memory_space<vmem>>, %arg2: memref<1x64xf32, #tpu.memory_space<vmem>>, %arg3: memref<32x32xf32, #tpu.memory_space<vmem>>, %arg4: memref<1x32xf32, #tpu.memory_space<vmem>>, %arg5: memref<16x32xf32, #tpu.memory_space<vmem>>, %arg6: memref<16x16xf32, #tpu.memory_space<vmem>>) attributes {dimension_semantics = [], scalar_prefetch = 0 : i64, scratch_operands = 0 : i64, tpu.core_type = #tpu.core_type<tc>} {
    %c0 = arith.constant 0 : index
    %c0_0 = arith.constant 0 : index
    %0 = vector.load %arg0[%c0, %c0_0] : memref<32x32xf32, #tpu.memory_space<vmem>>, vector<32x32xf32>
    %c0_1 = arith.constant 0 : index
    %c0_2 = arith.constant 0 : index
    %1 = vector.load %arg1[%c0_1, %c0_2] : memref<32x64xf32, #tpu.memory_space<vmem>>, vector<32x64xf32>
    %cst = arith.constant dense<0.000000e+00> : vector<32x64xf32>
    %2 = tpu.matmul %0, %1, %cst {dimension_numbers = #tpu.dot_dimension_numbers<[1], [0], [0], [1], [0, 0, 1, 1], [], []>} : vector<32x32xf32>, vector<32x64xf32>, vector<32x64xf32> -> vector<32x64xf32>
    %c0_3 = arith.constant 0 : index
    %c0_4 = arith.constant 0 : index
    %3 = vector.load %arg2[%c0_3, %c0_4] : memref<1x64xf32, #tpu.memory_space<vmem>>, vector<1x64xf32>
    %4 = vector.broadcast %3 : vector<1x64xf32> to vector<32x64xf32>
    %5 = arith.addf %2, %4 : vector<32x64xf32>
    %c0_5 = arith.constant 0 : index
    %c0_6 = arith.constant 0 : index
    %6 = vector.load %arg3[%c0_5, %c0_6] : memref<32x32xf32, #tpu.memory_space<vmem>>, vector<32x32xf32>
    %c0_7 = arith.constant 0 : index
    %c0_8 = arith.constant 0 : index
    %7 = vector.load %arg4[%c0_7, %c0_8] : memref<1x32xf32, #tpu.memory_space<vmem>>, vector<1x32xf32>
    %8 = vector.extract_strided_slice %5 {offsets = [0, 0], sizes = [8, 32], strides = [1, 1]} : vector<32x64xf32> to vector<8x32xf32>
    %9 = vector.extract_strided_slice %5 {offsets = [16, 32], sizes = [8, 32], strides = [1, 1]} : vector<32x64xf32> to vector<8x32xf32>
    %cst_9 = arith.constant 0.000000e+00 : f32
    %10 = vector.broadcast %cst_9 : f32 to vector<8x32xf32>
    %11 = vector.extract_strided_slice %8 {offsets = [0, 0], sizes = [8, 16], strides = [1, 1]} : vector<8x32xf32> to vector<8x16xf32>
    %12 = vector.extract_strided_slice %9 {offsets = [0, 0], sizes = [8, 16], strides = [1, 1]} : vector<8x32xf32> to vector<8x16xf32>
    %cst_10 = arith.constant dense<0.000000e+00> : vector<8x8xf32>
    %13 = tpu.matmul %12, %11, %cst_10 {dimension_numbers = #tpu.dot_dimension_numbers<[1], [1], [0], [0], [0, 0, 1, 0], [], []>} : vector<8x16xf32>, vector<8x16xf32>, vector<8x8xf32> -> vector<8x8xf32>
    %cst_11 = arith.constant dense<0xFF800000> : vector<8xf32>
    %14 = vector.multi_reduction <maximumf>, %13, %cst_11 [1] : vector<8x8xf32> to vector<8xf32>
    %15 = vector.shape_cast %14 : vector<8xf32> to vector<8x1xf32>
    %16 = vector.broadcast %15 : vector<8x1xf32> to vector<8x8xf32>
    %17 = arith.subf %13, %16 : vector<8x8xf32>
    %18 = math.exp %17 : vector<8x8xf32>
    %cst_12 = arith.constant dense<0.000000e+00> : vector<8xf32>
    %19 = vector.multi_reduction <add>, %18, %cst_12 [1] : vector<8x8xf32> to vector<8xf32>
    %20 = vector.shape_cast %19 : vector<8xf32> to vector<8x1xf32>
    %21 = tpu.reciprocal %20 : vector<8x1xf32> -> vector<8x1xf32>
    %22 = vector.broadcast %21 : vector<8x1xf32> to vector<8x8xf32>
    %23 = arith.mulf %18, %22 : vector<8x8xf32>
    %c0_13 = arith.constant 0 : index
    %c0_14 = arith.constant 0 : index
    %24 = vector.load %arg6[%c0_13, %c0_14] : memref<16x16xf32, #tpu.memory_space<vmem>>, vector<8x8xf32>
    tpu.vector_store %arg6[%c0_13, %c0_14], %23 {strides = array<i32>} : memref<16x16xf32, #tpu.memory_space<vmem>>, vector<8x8xf32>,
    %cst_15 = arith.constant dense<0.000000e+00> : vector<8x16xf32>
    %25 = tpu.matmul %23, %11, %cst_15 {dimension_numbers = #tpu.dot_dimension_numbers<[1], [0], [0], [1], [0, 0, 1, 1], [], []>} : vector<8x8xf32>, vector<8x16xf32>, vector<8x16xf32> -> vector<8x16xf32>
    %26 = vector.extract_strided_slice %6 {offsets = [0, 0], sizes = [16, 32], strides = [1, 1]} : vector<32x32xf32> to vector<16x32xf32>
    %cst_16 = arith.constant dense<0.000000e+00> : vector<8x32xf32>
    %27 = tpu.matmul %25, %26, %cst_16 {dimension_numbers = #tpu.dot_dimension_numbers<[1], [0], [0], [1], [0, 0, 1, 1], [], []>} : vector<8x16xf32>, vector<16x32xf32>, vector<8x32xf32> -> vector<8x32xf32>
    %28 = arith.addf %10, %27 : vector<8x32xf32>
    %29 = vector.extract_strided_slice %8 {offsets = [0, 16], sizes = [8, 16], strides = [1, 1]} : vector<8x32xf32> to vector<8x16xf32>
    %30 = vector.extract_strided_slice %9 {offsets = [0, 16], sizes = [8, 16], strides = [1, 1]} : vector<8x32xf32> to vector<8x16xf32>
    %cst_17 = arith.constant dense<0.000000e+00> : vector<8x8xf32>
    %31 = tpu.matmul %30, %29, %cst_17 {dimension_numbers = #tpu.dot_dimension_numbers<[1], [1], [0], [0], [0, 0, 1, 0], [], []>} : vector<8x16xf32>, vector<8x16xf32>, vector<8x8xf32> -> vector<8x8xf32>
    %cst_18 = arith.constant dense<0xFF800000> : vector<8xf32>
    %32 = vector.multi_reduction <maximumf>, %31, %cst_18 [1] : vector<8x8xf32> to vector<8xf32>
    %33 = vector.shape_cast %32 : vector<8xf32> to vector<8x1xf32>
    %34 = vector.broadcast %33 : vector<8x1xf32> to vector<8x8xf32>
    %35 = arith.subf %31, %34 : vector<8x8xf32>
    %36 = math.exp %35 : vector<8x8xf32>
    %cst_19 = arith.constant dense<0.000000e+00> : vector<8xf32>
    %37 = vector.multi_reduction <add>, %36, %cst_19 [1] : vector<8x8xf32> to vector<8xf32>
    %38 = vector.shape_cast %37 : vector<8xf32> to vector<8x1xf32>
    %39 = tpu.reciprocal %38 : vector<8x1xf32> -> vector<8x1xf32>
    %40 = vector.broadcast %39 : vector<8x1xf32> to vector<8x8xf32>
    %41 = arith.mulf %36, %40 : vector<8x8xf32>
    %c0_20 = arith.constant 0 : index
    %c8 = arith.constant 8 : index
    %42 = vector.load %arg6[%c0_20, %c8] : memref<16x16xf32, #tpu.memory_space<vmem>>, vector<8x8xf32>
    tpu.vector_store %arg6[%c0_20, %c8], %41 {strides = array<i32>} : memref<16x16xf32, #tpu.memory_space<vmem>>, vector<8x8xf32>,
    %cst_21 = arith.constant dense<0.000000e+00> : vector<8x16xf32>
    %43 = tpu.matmul %41, %29, %cst_21 {dimension_numbers = #tpu.dot_dimension_numbers<[1], [0], [0], [1], [0, 0, 1, 1], [], []>} : vector<8x8xf32>, vector<8x16xf32>, vector<8x16xf32> -> vector<8x16xf32>
    %44 = vector.extract_strided_slice %6 {offsets = [16, 0], sizes = [16, 32], strides = [1, 1]} : vector<32x32xf32> to vector<16x32xf32>
    %cst_22 = arith.constant dense<0.000000e+00> : vector<8x32xf32>
    %45 = tpu.matmul %43, %44, %cst_22 {dimension_numbers = #tpu.dot_dimension_numbers<[1], [0], [0], [1], [0, 0, 1, 1], [], []>} : vector<8x16xf32>, vector<16x32xf32>, vector<8x32xf32> -> vector<8x32xf32>
    %46 = arith.addf %28, %45 : vector<8x32xf32>
    %47 = vector.broadcast %7 : vector<1x32xf32> to vector<8x32xf32>
    %48 = arith.addf %46, %47 : vector<8x32xf32>
    %c0_23 = arith.constant 0 : index
    %c0_24 = arith.constant 0 : index
    %49 = vector.load %arg5[%c0_23, %c0_24] : memref<16x32xf32, #tpu.memory_space<vmem>>, vector<8x32xf32>
    tpu.vector_store %arg5[%c0_23, %c0_24], %48 {strides = array<i32>} : memref<16x32xf32, #tpu.memory_space<vmem>>, vector<8x32xf32>,
    %50 = vector.extract_strided_slice %5 {offsets = [8, 0], sizes = [8, 32], strides = [1, 1]} : vector<32x64xf32> to vector<8x32xf32>
    %51 = vector.extract_strided_slice %5 {offsets = [24, 32], sizes = [8, 32], strides = [1, 1]} : vector<32x64xf32> to vector<8x32xf32>
    %cst_25 = arith.constant 0.000000e+00 : f32
    %52 = vector.broadcast %cst_25 : f32 to vector<8x32xf32>
    %53 = vector.extract_strided_slice %50 {offsets = [0, 0], sizes = [8, 16], strides = [1, 1]} : vector<8x32xf32> to vector<8x16xf32>
    %54 = vector.extract_strided_slice %51 {offsets = [0, 0], sizes = [8, 16], strides = [1, 1]} : vector<8x32xf32> to vector<8x16xf32>
    %cst_26 = arith.constant dense<0.000000e+00> : vector<8x8xf32>
    %55 = tpu.matmul %54, %53, %cst_26 {dimension_numbers = #tpu.dot_dimension_numbers<[1], [1], [0], [0], [0, 0, 1, 0], [], []>} : vector<8x16xf32>, vector<8x16xf32>, vector<8x8xf32> -> vector<8x8xf32>
    %cst_27 = arith.constant dense<0xFF800000> : vector<8xf32>
    %56 = vector.multi_reduction <maximumf>, %55, %cst_27 [1] : vector<8x8xf32> to vector<8xf32>
    %57 = vector.shape_cast %56 : vector<8xf32> to vector<8x1xf32>
    %58 = vector.broadcast %57 : vector<8x1xf32> to vector<8x8xf32>
    %59 = arith.subf %55, %58 : vector<8x8xf32>
    %60 = math.exp %59 : vector<8x8xf32>
    %cst_28 = arith.constant dense<0.000000e+00> : vector<8xf32>
    %61 = vector.multi_reduction <add>, %60, %cst_28 [1] : vector<8x8xf32> to vector<8xf32>
    %62 = vector.shape_cast %61 : vector<8xf32> to vector<8x1xf32>
    %63 = tpu.reciprocal %62 : vector<8x1xf32> -> vector<8x1xf32>
    %64 = vector.broadcast %63 : vector<8x1xf32> to vector<8x8xf32>
    %65 = arith.mulf %60, %64 : vector<8x8xf32>
    %c8_29 = arith.constant 8 : index
    %c0_30 = arith.constant 0 : index
    %66 = vector.load %arg6[%c8_29, %c0_30] : memref<16x16xf32, #tpu.memory_space<vmem>>, vector<8x8xf32>
    tpu.vector_store %arg6[%c8_29, %c0_30], %65 {strides = array<i32>} : memref<16x16xf32, #tpu.memory_space<vmem>>, vector<8x8xf32>,
    %cst_31 = arith.constant dense<0.000000e+00> : vector<8x16xf32>
    %67 = tpu.matmul %65, %53, %cst_31 {dimension_numbers = #tpu.dot_dimension_numbers<[1], [0], [0], [1], [0, 0, 1, 1], [], []>} : vector<8x8xf32>, vector<8x16xf32>, vector<8x16xf32> -> vector<8x16xf32>
    %68 = vector.extract_strided_slice %6 {offsets = [0, 0], sizes = [16, 32], strides = [1, 1]} : vector<32x32xf32> to vector<16x32xf32>
    %cst_32 = arith.constant dense<0.000000e+00> : vector<8x32xf32>
    %69 = tpu.matmul %67, %68, %cst_32 {dimension_numbers = #tpu.dot_dimension_numbers<[1], [0], [0], [1], [0, 0, 1, 1], [], []>} : vector<8x16xf32>, vector<16x32xf32>, vector<8x32xf32> -> vector<8x32xf32>
    %70 = arith.addf %52, %69 : vector<8x32xf32>
    %71 = vector.extract_strided_slice %50 {offsets = [0, 16], sizes = [8, 16], strides = [1, 1]} : vector<8x32xf32> to vector<8x16xf32>
    %72 = vector.extract_strided_slice %51 {offsets = [0, 16], sizes = [8, 16], strides = [1, 1]} : vector<8x32xf32> to vector<8x16xf32>
    %cst_33 = arith.constant dense<0.000000e+00> : vector<8x8xf32>
    %73 = tpu.matmul %72, %71, %cst_33 {dimension_numbers = #tpu.dot_dimension_numbers<[1], [1], [0], [0], [0, 0, 1, 0], [], []>} : vector<8x16xf32>, vector<8x16xf32>, vector<8x8xf32> -> vector<8x8xf32>
    %cst_34 = arith.constant dense<0xFF800000> : vector<8xf32>
    %74 = vector.multi_reduction <maximumf>, %73, %cst_34 [1] : vector<8x8xf32> to vector<8xf32>
    %75 = vector.shape_cast %74 : vector<8xf32> to vector<8x1xf32>
    %76 = vector.broadcast %75 : vector<8x1xf32> to vector<8x8xf32>
    %77 = arith.subf %73, %76 : vector<8x8xf32>
    %78 = math.exp %77 : vector<8x8xf32>
    %cst_35 = arith.constant dense<0.000000e+00> : vector<8xf32>
    %79 = vector.multi_reduction <add>, %78, %cst_35 [1] : vector<8x8xf32> to vector<8xf32>
    %80 = vector.shape_cast %79 : vector<8xf32> to vector<8x1xf32>
    %81 = tpu.reciprocal %80 : vector<8x1xf32> -> vector<8x1xf32>
    %82 = vector.broadcast %81 : vector<8x1xf32> to vector<8x8xf32>
    %83 = arith.mulf %78, %82 : vector<8x8xf32>
    %c8_36 = arith.constant 8 : index
    %c8_37 = arith.constant 8 : index
    %84 = vector.load %arg6[%c8_36, %c8_37] : memref<16x16xf32, #tpu.memory_space<vmem>>, vector<8x8xf32>
    tpu.vector_store %arg6[%c8_36, %c8_37], %83 {strides = array<i32>} : memref<16x16xf32, #tpu.memory_space<vmem>>, vector<8x8xf32>,
    %cst_38 = arith.constant dense<0.000000e+00> : vector<8x16xf32>
    %85 = tpu.matmul %83, %71, %cst_38 {dimension_numbers = #tpu.dot_dimension_numbers<[1], [0], [0], [1], [0, 0, 1, 1], [], []>} : vector<8x8xf32>, vector<8x16xf32>, vector<8x16xf32> -> vector<8x16xf32>
    %86 = vector.extract_strided_slice %6 {offsets = [16, 0], sizes = [16, 32], strides = [1, 1]} : vector<32x32xf32> to vector<16x32xf32>
    %cst_39 = arith.constant dense<0.000000e+00> : vector<8x32xf32>
    %87 = tpu.matmul %85, %86, %cst_39 {dimension_numbers = #tpu.dot_dimension_numbers<[1], [0], [0], [1], [0, 0, 1, 1], [], []>} : vector<8x16xf32>, vector<16x32xf32>, vector<8x32xf32> -> vector<8x32xf32>
    %88 = arith.addf %70, %87 : vector<8x32xf32>
    %89 = vector.broadcast %7 : vector<1x32xf32> to vector<8x32xf32>
    %90 = arith.addf %88, %89 : vector<8x32xf32>
    %c8_40 = arith.constant 8 : index
    %c0_41 = arith.constant 0 : index
    %91 = vector.load %arg5[%c8_40, %c0_41] : memref<16x32xf32, #tpu.memory_space<vmem>>, vector<8x32xf32>
    tpu.vector_store %arg5[%c8_40, %c0_41], %90 {strides = array<i32>} : memref<16x32xf32, #tpu.memory_space<vmem>>, vector<8x32xf32>,
    return
  }
}

</mosaic_0001>

<bundles_post_ra>
// kernel: tpu_custom_call.1
= control target key start
LH: loop header
LB: loop body
LE: loop exit
PB: predicated region body
PF: predicated region fallthrough
CT: control target
= control target key end

     0   :  { %12 = vsyncpa [#allocation3], 0  ;;  %s1638_s0 = inlined_call_operand.hbm [shape: f32[32,32], index: 0, kind: input, shape index: {}]   ;;  %s1639_s1 = inlined_call_operand.hbm [shape: f32[32,64], index: 1, kind: input, shape index: {}]   ;;  %s1640_s2 = inlined_call_operand.vmem [shape: f32[1,64], index: 2, kind: input, shape index: {}]   ;;  %s1641_s3 = inlined_call_operand.hbm [shape: f32[32,32], index: 3, kind: input, shape index: {}]   ;;  %s1642_s4 = inlined_call_operand.vmem [shape: f32[1,32], index: 4, kind: input, shape index: {}]   ;;  %s1643_s5 = inlined_call_operand.hbm [shape: f32[16,32], index: 5, kind: output, shape index: {0}]   ;;  %s1644_s6 = inlined_call_operand.hbm [shape: f32[16,16], index: 6, kind: output, shape index: {1}]  }
   0x1   :  { %13 = vsyncpa [#allocation6], 0 }
   0x2   :  { %14 = vsyncpa [#allocation4], 0 }
   0x3   :  { %15 = vsyncpa [#allocation10], 0  ;;  %s1458_s21 = smov [#allocation5]   ;;  %s1459_s23 = smov [#allocation2]  }
   0x4   :  { %s33_s22 = sshll.u32 %s1458_s21, 4  ;;  %s21_s24 = sshll.u32 %s1459_s23, 4  ;;  %s34_s22 = int_to_ptr.vmem [resolvable:$true] %s33_s22  ;;  %s22_s24 = int_to_ptr.vmem [resolvable:$true] %s21_s24 }
   0x5   :  { %s1358_s25 = scalar_lea.vmem %s34_s22, 512  ;;  %p1363_p1 = scmp.lt.s32.totalorder %s34_s22, %s34_s22 }
   0x6   :  { %p1359_p0 = scmp.ne.s32.totalorder %s34_s22, %s1358_s25  ;;  %p1364_p2 = scmp.lt.s32.totalorder %s1358_s25, %s1358_s25 }
   0x8   :  { %p1365_p3 = por %p1364_p2, %p1363_p1 }
   0xa   :  { %p1366_p4 = pnand %p1365_p3, %p1359_p0 }
   0xc   :  { %1369 = shalt.err (!%p1366_p4)
}
   0xd   :  { %s1460_s26 = smov 128   ;;  %s1461_s27 = smov 8  }
   0xe   :  { %39 = dma.hbm_to_vmem [thread:$0]  %s1639_s1, 512, %s34_s22, [#allocation6], %s1460_s26, %s1460_s26, %s1461_s27  }
   0xf   :  { %s1378_s30 = scalar_lea.vmem %s22_s24, 512  ;;  %p1383_p6 = scmp.lt.s32.totalorder %s22_s24, %s22_s24 }
  0x10   :  { %p1379_p5 = scmp.ne.s32.totalorder %s22_s24, %s1378_s30  ;;  %p1384_p7 = scmp.lt.s32.totalorder %s1378_s30, %s1378_s30 }
  0x12   :  { %p1385_p8 = por %p1384_p7, %p1383_p6 }
  0x14   :  { %p1386_p9 = pnand %p1385_p8, %p1379_p5 }
  0x16   :  { %1389 = shalt.err (!%p1386_p9)
}
  0x17   :  { %27 = dma.hbm_to_vmem [thread:$0]  %s1638_s0, 512, %s22_s24, [#allocation3], %s1460_s26, %s1460_s26, %s1461_s27  }
  0x18   :  { %s1462_s9 = smov [#allocation7]  }
  0x19   :  { %s47_s10 = sshll.u32 %s1462_s9, 4  ;;  %s48_s10 = int_to_ptr.vmem [resolvable:$true] %s47_s10 }
  0x1a   :  { %s1398_s11 = scalar_lea.vmem %s48_s10, 512  ;;  %p1403_p11 = scmp.lt.s32.totalorder %s48_s10, %s48_s10 }
  0x1b   :  { %p1399_p10 = scmp.ne.s32.totalorder %s48_s10, %s1398_s11  ;;  %p1404_p12 = scmp.lt.s32.totalorder %s1398_s11, %s1398_s11 }
  0x1d   :  { %p1405_p13 = por %p1404_p12, %p1403_p11 }
  0x1f   :  { %p1406_p0 = pnand %p1405_p13, %p1399_p10 }
  0x21   :  { %1409 = shalt.err (!%p1406_p0)
}
  0x22   :  { %53 = dma.hbm_to_vmem [thread:$0]  %s1641_s3, 512, %s48_s10, [#allocation6], %s1460_s26, %s1460_s26, %s1461_s27  }
  0x23   :  { %1450 = dma.done.wait [#allocation3], 512  }
  0x24   :  { %1451 = vsyncadd [#allocation3], 4294966784 }
  0x25   :  { %1452 = dma.done.wait [#allocation6], 1024  }
  0x26   :  { %1453 = vsyncadd [#allocation6], 4294966272  ;;  %vm80_vm0 = vcmask 261120   ;;  %v72_v0 = vld [vmem:[#allocation5 + $0x18] sm:$0xff]  ;;  %v71_v1 = vld [vmem:[#allocation5 + $0x10] sm:$0xff]  ;;  %v1463_v8 = vmov 0.0  }
  0x27   :  { %1240 = vmatprep.subr.mxu0 %v72_v0  ;;  %v65_v2 = vld [vmem:[#allocation2] sm:$0xff]  ;;  %v70_v3 = vld [vmem:[#allocation5 + $0x8] sm:$0xff]  ;;  %v67_v6 = vld [vmem:[#allocation2 + $0x10] sm:$0xff]  ;;  %1254 = vmatprep.subr.mxu1 %v1463_v8  ;;  %vm1464_vm1 = vmmov 0   ;;  %vm186_vm2 = vcmask 130048   ;;  %s1465_s13 = smov 112  }
  0x28   :  { %1241 = vmatpush3.msra.mxu0 %v72_v0  ;;  %1248 = vmatprep.mubr.msk.f32.mxu0 %vm80_vm0, %v65_v2  ;;  %v69_v4 = vld [vmem:[#allocation5] sm:$0xff]  ;;  %v66_v5 = vld [vmem:[#allocation2 + $0x8] sm:$0xff]  ;;  %v68_v7 = vld [vmem:[#allocation2 + $0x18] sm:$0xff]  ;;  %s1466_s14 = smov 96   ;;  %vm262_vm3 = vcmask 64512   ;;  %vm441_vm4 = vcmask 130112  }
  0x29   :  { %1242 = vmatprep.subr.mxu0 %v71_v1  ;;  %1256 = vmatprep.mubr.msk.f32.mxu1 %vm1464_vm1, %v1463_v8  ;;  %v1182_v9 = vld [vmem:[%s1640_s2] ss:$0 sm:$0xff]  ;;  %s1467_s2 = smov 80   ;;  %v181_v42 = vld [vmem:[#allocation7 + $0x18] sm:$0xff]  ;;  %v180_v43 = vld [vmem:[#allocation7 + $0x10] sm:$0xff] }
  0x2a   :  { %1243 = vmatpush3.msra.mxu0 %v71_v1  ;;  %v1565_v47 = vld [vmem:[#allocation7 + $0x8] sm:$0xff]  ;;  %v1568_v48 = vld [vmem:[#allocation7] sm:$0xff] }
  0x2b   :  { %1244 = vmatprep.subr.mxu0 %v70_v3  ;;  %v1599_v56 = vld [vmem:[%s1642_s4] ss:$0 sm:$0xff]  ;;  %s1468_s4 = smov [#allocation9]  }
  0x2c   :  { %1245 = vmatpush3.msra.mxu0 %v70_v3  ;;  %s1165_s17 = sshll.u32 %s1468_s4, 4  ;;  %s1166_s17 = int_to_ptr.vmem [resolvable:$true] %s1165_s17 }
  0x2d   :  { %1246 = vmatprep.subr.mxu0 %v69_v4  ;;  %s1410_s18 = scalar_lea.vmem %s1166_s17, 256  ;;  %p1415_p2 = scmp.lt.s32.totalorder %s1166_s17, %s1166_s17 }
  0x2e   :  { %1247 = vmatpush3.msra.mxu0 %v69_v4  ;;  %p1411_p1 = scmp.ne.s32.totalorder %s1166_s17, %s1410_s18  ;;  %p1416_p3 = scmp.lt.s32.totalorder %s1410_s18, %s1410_s18 }
  0x2f   :  { %1249 = vmatmul.mubr.msk.f32.vlgmr.msra.gmra.mxu0 %vm80_vm0, %v66_v5  ;;  %1269 = vmatprep.subr.mxu0 %v1463_v8 }
  0x30   :  { %1251 = vmatprep.mubr.msk.f32.mxu0 %vm80_vm0, %v67_v6  ;;  %p1417_p4 = por %p1416_p3, %p1415_p2 }
  0x32   :  { %p1418_p5 = pnand %p1417_p4, %p1411_p1 }
  0x33   :  { %1252 = vmatmul.mubr.msk.f32.gmra.mxu0 %vm80_vm0, %v68_v7 }
  0x34   :  { %1271 = vmatprep.mubr.msk.f32.mxu0 %vm1464_vm1, %v1463_v8 }
  0xef   :  { %v1250_v10 = vpop.f32.mrf.mxu0 }
  0xf0   :  { %v1536_v11 = vadd.f32 %v1250_v10, %v1182_v9 }
  0xf1   :  { %v159_v12 = vpop.f32.mrf.mxu0 }
  0xf2   :  { %v160_v13 = vadd.f32 %v1182_v9, %v159_v12 }
  0xf3   :  { %v1253_v14 = vpop.f32.mrf.mxu0 }
  0xf4   :  { %v175_v15 = vadd.f32 %v1253_v14, %v1182_v9  ;;  %350 = vrot.lane.b32.xlu1 %v160_v13, %s1465_s13  ;;  %1255 = vmatpush3.xpose.msk.msra.mxu1 %vm186_vm2, %v160_v13 }
  0xf5   :  { %v169_v16 = vpop.f32.mrf.mxu0  ;;  %1259 = vmatprep.subr.mxu1 %v1463_v8 }
  0xf6   :  { %v170_v17 = vadd.f32 %v1182_v9, %v169_v16 }
  0xf8   :  { %184 = vrot.lane.b32.xlu0 %v170_v17, %s1466_s14 }
 0x166   :  { %v351_v18 = vpop.permute.xlu1 %350 }
 0x167   :  { %1270 = vmatpush3.msra.mxu0 %v351_v18 }
 0x168   :  { %1281 = vmatprep.subr.mxu0 %v1463_v8 }
 0x16a   :  { %v185_v19 = vpop.permute.xlu0 %184 }
 0x16b   :  { %1257 = vmatmul.mubr.msk.f32.vlgmr.msra.gmra.mxu1 %vm186_vm2, %v185_v19 }
 0x16c   :  { %1260 = vmatpush3.msra.mxu1 %v160_v13  ;;  %1261 = vmatprep.mubr.msk.f32.mxu1 %vm1464_vm1, %v1463_v8 }
 0x16d   :  { %1264 = vmatprep.subr.mxu1 %v1463_v8 }
 0x22b   :  { %v258_v20 = vpop.f32.mrf.mxu1 }
 0x22c   :  { %v263_v21 = vsel %vm262_vm3, %v258_v20, -inf }
 0x22d   :  { %264 = vmax.xlane.f32.xlu0 %v263_v21  ;;  %v1258_v22 = vpop.f32.mrf.mxu1 }
 0x2b6   :  { %v265_v23 = vpop.xlane.xlu0 %264 }
 0x2b7   :  { %v266_v24 = vsub.f32 %v258_v20, %v265_v23 }
 0x2b9   :  { %v267_v25 = vmul.f32 1.442695, %v266_v24 }
 0x2bb   :  { %1334 = vpow2.f32 %v267_v25 }
 0x2c8   :  { %v1335_v26 = vpop.eup %1334 }
 0x2c9   :  { %v269_v27 = vsel %vm262_vm3, %v1335_v26, 0.0 }
 0x2ca   :  { %270 = vadd.xlane.f32.xlu1 %v269_v27 }
 0x2db   :  { %348 = vrot.lane.b32.xlu1 %v170_v17, %s1467_s2 }
 0x353   :  { %v271_v28 = vpop.xlane.xlu1 %270 }
 0x354   :  { %1336 = vrcp.f32 %v271_v28 }
 0x357   :  { %v349_v31 = vpop.permute.xlu1 %348 }
 0x361   :  { %v1337_v29 = vpop.eup %1336 }
 0x362   :  { %v273_v30 = vmul.f32 %v1337_v29, %v1335_v26 }
 0x364   :  { %1262 = vmatmul.mubr.msk.f32.vlgmr.msra.gmra.mxu1 %vm262_vm3, %v273_v30  ;;  %274 = vst.msk [vmem:[#allocation9] sm:$0xff] %vm262_vm3, %v273_v30 }
 0x365   :  { %1265 = vmatpush3.xpose.msk.msra.mxu1 %vm186_vm2, %v351_v18  ;;  %1266 = vmatprep.mubr.msk.f32.mxu1 %vm1464_vm1, %v1463_v8 }
 0x366   :  { %1274 = vmatprep.subr.mxu1 %v1463_v8 }
 0x368   :  { %1267 = vmatmul.mubr.msk.f32.vlgmr.msra.gmra.mxu1 %vm186_vm2, %v349_v31 }
 0x369   :  { %1278 = vmatprep.mubr.msk.f32.mxu1 %vm1464_vm1, %v1463_v8  ;;  %1275 = vmatpush3.msra.mxu1 %v181_v42 }
 0x36a   :  { %1276 = vmatprep.subr.mxu1 %v1463_v8 }
 0x36b   :  { %1277 = vmatpush3.msra.mxu1 %v180_v43 }
 0x36c   :  { %1288 = vmatprep.subr.mxu1 %v1463_v8 }
 0x424   :  { %v344_v32 = vpop.f32.mrf.mxu1 }
 0x426   :  { %v1263_v33 = vpop.f32.mrf.mxu1 }
 0x428   :  { %v422_v34 = vpop.f32.mrf.mxu1 }
 0x429   :  { %v426_v35 = vsel %vm262_vm3, %v422_v34, -inf }
 0x42a   :  { %427 = vmax.xlane.f32.xlu1 %v426_v35  ;;  %v1268_v36 = vpop.f32.mrf.mxu1 }
 0x43b   :  { %833 = vrot.lane.b32.xlu1 %v175_v15, %s1467_s2 }
 0x4b3   :  { %v428_v37 = vpop.xlane.xlu1 %427 }
 0x4b4   :  { %v429_v38 = vsub.f32 %v422_v34, %v428_v37 }
 0x4b6   :  { %v430_v39 = vmul.f32 1.442695, %v429_v38 }
 0x4b7   :  { %v834_v55 = vpop.permute.xlu1 %833 }
 0x4b8   :  { %1338 = vpow2.f32 %v430_v39 }
 0x4c5   :  { %v1339_v40 = vpop.eup %1338 }
 0x4c6   :  { %v432_v41 = vsel %vm262_vm3, %v1339_v40, 0.0 }
 0x4c7   :  { %433 = vadd.xlane.f32.xlu0 %v432_v41 }
 0x4dd   :  { %671 = vrot.lane.b32.xlu0 %v175_v15, %s1466_s14 }
 0x4e1   :  { %835 = vrot.lane.b32.xlu0 %v1536_v11, %s1465_s13 }
 0x550   :  { %v434_v44 = vpop.xlane.xlu0 %433 }
 0x551   :  { %1340 = vrcp.f32 %v434_v44 }
 0x554   :  { %v672_v49 = vpop.permute.xlu0 %671 }
 0x558   :  { %v836_v53 = vpop.permute.xlu0 %835 }
 0x55e   :  { %v1341_v45 = vpop.eup %1340 }
 0x55f   :  { %v436_v46 = vmul.f32 %v1341_v45, %v1339_v40 }
 0x561   :  { %1272 = vmatmul.mubr.msk.f32.vlgmr.msra.gmra.mxu0 %vm262_vm3, %v436_v46 }
 0x562   :  { %1282 = vmatpush3.msra.mxu0 %v1565_v47  ;;  %1285 = vmatprep.mubr.msk.f32.mxu0 %vm1464_vm1, %v1463_v8 }
 0x563   :  { %1283 = vmatprep.subr.mxu0 %v1463_v8 }
 0x564   :  { %1284 = vmatpush3.msra.mxu0 %v1568_v48 }
 0x565   :  { %1293 = vmatprep.subr.mxu0 %v1463_v8  ;;  %1286 = vmatmul.mubr.msk.f32.vlgmr.msra.gmra.mxu0 %vm186_vm2, %v344_v32 }
 0x566   :  { %1294 = vmatpush3.msra.mxu0 %v1536_v11  ;;  %1295 = vmatprep.mubr.msk.f32.mxu0 %vm1464_vm1, %v1463_v8 }
 0x567   :  { %1303 = vmatprep.subr.mxu0 %v1463_v8 }
 0x621   :  { %v512_v50 = vpop.f32.mrf.mxu0 }
 0x622   :  { %1279 = vmatmul.mubr.msk.f32.vlgmr.msra.gmra.mxu1 %vm186_vm2, %v512_v50 }
 0x623   :  { %1289 = vmatpush3.xpose.msk.msra.mxu1 %vm186_vm2, %v1536_v11  ;;  %v1273_v51 = vpop.f32.mrf.mxu0  ;;  %1290 = vmatprep.mubr.msk.f32.mxu1 %vm1464_vm1, %v1463_v8 }
 0x624   :  { %1298 = vmatprep.subr.mxu1 %v1463_v8 }
 0x625   :  { %v658_v52 = vpop.f32.mrf.mxu0 }
 0x626   :  { %1291 = vmatmul.mubr.msk.f32.vlgmr.msra.gmra.mxu1 %vm186_vm2, %v672_v49 }
 0x627   :  { %1299 = vmatpush3.xpose.msk.msra.mxu1 %vm186_vm2, %v836_v53  ;;  %v1287_v54 = vpop.f32.mrf.mxu0  ;;  %1300 = vmatprep.mubr.msk.f32.mxu1 %vm1464_vm1, %v1463_v8 }
 0x628   :  { %1308 = vmatprep.subr.mxu1 %v1463_v8 }
 0x62a   :  { %1301 = vmatmul.mubr.msk.f32.vlgmr.msra.gmra.mxu1 %vm186_vm2, %v834_v55 }
 0x62b   :  { %1309 = vmatpush3.msra.mxu1 %v181_v42  ;;  %1312 = vmatprep.mubr.msk.f32.mxu1 %vm1464_vm1, %v1463_v8 }
 0x62c   :  { %1310 = vmatprep.subr.mxu1 %v1463_v8 }
 0x62d   :  { %1311 = vmatpush3.msra.mxu1 %v180_v43 }
 0x6e2   :  { %v585_v57 = vpop.f32.mrf.mxu1 }
 0x6e3   :  { %v659_v58 = vadd.f32 %v658_v52, %v585_v57 }
 0x6e4   :  { %v1280_v59 = vpop.f32.mrf.mxu1 }
 0x6e5   :  { %v668_v60 = vadd.f32 %v1599_v56, %v659_v58 }
 0x6e6   :  { %v744_v61 = vpop.f32.mrf.mxu1 }
 0x6e7   :  { %669 = vst.msk [vmem:[#allocation8] sm:$0xff] %vm80_vm0, %v668_v60  ;;  %v748_v62 = vsel %vm262_vm3, %v744_v61, -inf }
 0x6e8   :  { %749 = vmax.xlane.f32.xlu0 %v748_v62  ;;  %v1292_v63 = vpop.f32.mrf.mxu1 }
 0x6ea   :  { %v907_v0 = vpop.f32.mrf.mxu1 }
 0x6eb   :  { %v911_v1 = vsel %vm262_vm3, %v907_v0, -inf }
 0x6ec   :  { %912 = vmax.xlane.f32.xlu1 %v911_v1  ;;  %v1302_v2 = vpop.f32.mrf.mxu1 }
 0x771   :  { %v750_v3 = vpop.xlane.xlu0 %749 }
 0x772   :  { %v751_v4 = vsub.f32 %v744_v61, %v750_v3 }
 0x774   :  { %v752_v5 = vmul.f32 1.442695, %v751_v4 }
 0x775   :  { %v913_v6 = vpop.xlane.xlu1 %912 }
 0x776   :  { %1342 = vpow2.f32 %v752_v5  ;;  %v914_v7 = vsub.f32 %v907_v0, %v913_v6 }
 0x778   :  { %v915_v9 = vmul.f32 1.442695, %v914_v7 }
 0x77a   :  { %1344 = vpow2.f32 %v915_v9 }
 0x783   :  { %v1343_v10 = vpop.eup %1342 }
 0x784   :  { %v754_v11 = vsel %vm262_vm3, %v1343_v10, 0.0 }
 0x785   :  { %755 = vadd.xlane.f32.xlu0 %v754_v11 }
 0x787   :  { %v1345_v12 = vpop.eup %1344 }
 0x788   :  { %v917_v13 = vsel %vm262_vm3, %v1345_v12, 0.0 }
 0x789   :  { %918 = vadd.xlane.f32.xlu0 %v917_v13 }
 0x79f   :  { %438 = vrot.lane.b32.xlu0 %v436_v46, %s1461_s27 }
 0x80e   :  { %v756_v14 = vpop.xlane.xlu0 %755 }
 0x80f   :  { %1346 = vrcp.f32 %v756_v14 }
 0x812   :  { %v919_v15 = vpop.xlane.xlu0 %918 }
 0x813   :  { %1348 = vrcp.f32 %v919_v15 }
 0x816   :  { %v439_v16 = vpop.permute.xlu0 %438 }
 0x817   :  { %442 = vst.msk [vmem:[#allocation9] sm:$0xff] %vm441_vm4, %v439_v16 }
 0x81c   :  { %v1347_v17 = vpop.eup %1346 }
 0x81d   :  { %v758_v18 = vmul.f32 %v1347_v17, %v1343_v10 }
 0x81f   :  { %1296 = vmatmul.mubr.msk.f32.vlgmr.msra.gmra.mxu0 %vm262_vm3, %v758_v18  ;;  %759 = vst.msk [vmem:[#allocation9 + $0x8] sm:$0xff] %vm262_vm3, %v758_v18 }
 0x820   :  { %v1349_v19 = vpop.eup %1348  ;;  %1304 = vmatpush3.msra.mxu0 %v836_v53  ;;  %1305 = vmatprep.mubr.msk.f32.mxu0 %vm1464_vm1, %v1463_v8 }
 0x821   :  { %v921_v20 = vmul.f32 %v1349_v19, %v1345_v12  ;;  %1315 = vmatprep.subr.mxu0 %v1463_v8 }
 0x823   :  { %923 = vrot.lane.b32.xlu1 %v921_v20, %s1461_s27  ;;  %1306 = vmatmul.mubr.msk.f32.vlgmr.msra.gmra.mxu0 %vm262_vm3, %v921_v20 }
 0x824   :  { %1316 = vmatpush3.msra.mxu0 %v1565_v47  ;;  %1319 = vmatprep.mubr.msk.f32.mxu0 %vm1464_vm1, %v1463_v8 }
 0x825   :  { %1317 = vmatprep.subr.mxu0 %v1463_v8 }
 0x826   :  { %1318 = vmatpush3.msra.mxu0 %v1568_v48 }
 0x895   :  { %v924_v21 = vpop.permute.xlu1 %923 }
 0x896   :  { %926 = vst.msk [vmem:[#allocation9 + $0x8] sm:$0xff] %vm441_vm4, %v924_v21 }
 0x8df   :  { %v829_v22 = vpop.f32.mrf.mxu0 }
 0x8e0   :  { %1320 = vmatmul.mubr.msk.f32.vlgmr.msra.gmra.mxu0 %vm186_vm2, %v829_v22 }
 0x8e1   :  { %v1297_v23 = vpop.f32.mrf.mxu0 }
 0x8e3   :  { %v996_v24 = vpop.f32.mrf.mxu0 }
 0x8e4   :  { %1313 = vmatmul.mubr.msk.f32.vlgmr.msra.gmra.mxu1 %vm186_vm2, %v996_v24 }
 0x8e5   :  { %v1307_v25 = vpop.f32.mrf.mxu0 }
 0x8e6   :  { %1421 = shalt.err (!%p1418_p5)
}
 0x8e7   :  { %1171 = dma.vmem_to_hbm [thread:$0]  %s1166_s17, 256, %s1644_s6, [#allocation10], %s1460_s26, %s1460_s26, %s1461_s27  }
 0x8e8   :  { %s1469_s21 = smov [#allocation8]  }
 0x8e9   :  { %s1153_s22 = sshll.u32 %s1469_s21, 4  ;;  %s1154_s22 = int_to_ptr.vmem [resolvable:$true] %s1153_s22 }
 0x8ea   :  { %s1430_s23 = scalar_lea.vmem %s1154_s22, 256  ;;  %p1435_p7 = scmp.lt.s32.totalorder %s1154_s22, %s1154_s22 }
 0x8eb   :  { %p1431_p6 = scmp.ne.s32.totalorder %s1154_s22, %s1430_s23  ;;  %p1436_p8 = scmp.lt.s32.totalorder %s1430_s23, %s1430_s23 }
 0x8ed   :  { %p1437_p9 = por %p1436_p8, %p1435_p7 }
 0x8ef   :  { %p1438_p10 = pnand %p1437_p9, %p1431_p6 }
 0x9a0   :  { %v1142_v8 = vpop.f32.mrf.mxu0 }
 0x9a2   :  { %v1321_v26 = vpop.f32.mrf.mxu0 }
 0x9a4   :  { %v1069_v27 = vpop.f32.mrf.mxu1 }
 0x9a5   :  { %v1143_v28 = vadd.f32 %v1142_v8, %v1069_v27 }
 0x9a6   :  { %v1314_v29 = vpop.f32.mrf.mxu1 }
 0x9a7   :  { %v1146_v30 = vadd.f32 %v1599_v56, %v1143_v28 }
 0x9a9   :  { %1147 = vst.msk [vmem:[#allocation8 + $0x8] sm:$0xff] %vm80_vm0, %v1146_v30 }
 0x9aa   :  { %1441 = shalt.err (!%p1438_p10)
}
 0x9ab   :  { %1159 = dma.vmem_to_hbm [thread:$0]  %s1154_s22, 256, %s1643_s5, [#allocation4], %s1460_s26, %s1460_s26, %s1461_s27  }
 0x9ac   :  { %1454 = dma.done.wait [#allocation4], 256  }
 0x9ad   :  { %1455 = vsyncadd [#allocation4], 4294967040 }
 0x9ae   :  { %1456 = dma.done.wait [#allocation10], 256  }
 0x9af   :  { %1457 = vsyncadd [#allocation10], 4294967040 }
 0x9b0   :  { %1178 = vsyncpa [#allocation3], 1 }
 0x9b1   :  { %1179 = vsyncpa [#allocation6], 1 }
 0x9b2   :  { %1180 = vsyncpa [#allocation4], 1 }
 0x9b3   :  { %1181 = vsyncpa [#allocation10], 1 }

</bundles_post_ra>
